<compile_context>
chip_gen: v5e
topology: v5e:2x2
jax: 0.10.0
libtpu: 0.0.40
codegen_flags: <defaults>
</compile_context>

<pallas_src>
import jax
import jax.numpy as jnp
from jax.experimental import pallas as pl
from jax.experimental.pallas import tpu as pltpu


# ---------------------------------------------------------------------------
# Explicit-copy kernel: one HBM->HBM DMA of the whole (rows, cols) buffer.
# ---------------------------------------------------------------------------
def _hbm_copy_kernel(x_hbm_ref, o_hbm_ref, sem):
    cp = pltpu.make_async_copy(x_hbm_ref, o_hbm_ref, sem)
    cp.start()
    cp.wait()


def _pallas_identity_copy(x2d):
    """Materialize a copy of a 2-D array via a single HBM->HBM DMA."""
    rows, cols = x2d.shape
    itemsize = jnp.dtype(x2d.dtype).itemsize
    return pl.pallas_call(
        _hbm_copy_kernel,
        out_shape=jax.ShapeDtypeStruct((rows, cols), x2d.dtype),
        in_specs=[pl.BlockSpec(memory_space=pl.ANY)],   # raw HBM ref, no auto-DMA
        out_specs=pl.BlockSpec(memory_space=pl.ANY),    # raw HBM ref, DMA target
        scratch_shapes=[pltpu.SemaphoreType.DMA],
        cost_estimate=pl.CostEstimate(
            flops=0,
            transcendentals=0,
            bytes_accessed=2 * rows * cols * itemsize,  # one read + one write
        ),
    )(x2d)


# ---------------------------------------------------------------------------
# Module-equivalent forward passes.
# ---------------------------------------------------------------------------
def _validate(x, new_shape):
    num_elements = 1
    for d in new_shape:
        num_elements *= d
    if x.shape[1] != num_elements:
        raise ValueError("Total number of elements must be the same after reshape")
    return (x.shape[0],) + tuple(new_shape)


def reshape_forward(x, new_shape):
    """Equivalent of Reshape(new_shape).forward(x).

    The optimal TPU implementation: a row-major reshape of a contiguous
    (batch, N) array is metadata-only (no HBM traffic, no kernel launch).
    """
    out_shape = _validate(x, new_shape)
    return x.reshape(out_shape)


_MIN_COPY_BYTES = 4 * 1024 * 1024  # below this, kernel overhead dominates


def reshape_forward_copy(x, new_shape, *, force=False):
    """Explicit-copy variant (benchmarking / pedagogy only).

    Falls back to the metadata-only reshape for small or lane-unfriendly
    inputs unless `force=True`.
    """
    out_shape = _validate(x, new_shape)
    batch, n = x.shape
    itemsize = jnp.dtype(x.dtype).itemsize
    total_bytes = batch * n * itemsize

    lane_friendly = (n % 128 == 0)
    if not force and (total_bytes < _MIN_COPY_BYTES or not lane_friendly):
        # Fastest path: metadata-only reshape.
        return x.reshape(out_shape)
    if not lane_friendly:
        # TODO(synk): odd last-dim HBM copy — just use the metadata reshape.
        return x.reshape(out_shape)

    flat = _pallas_identity_copy(x)          # single HBM->HBM DMA
    return flat.reshape(out_shape)           # metadata-only view of the copy


if __name__ == "__main__":
    key = jax.random.PRNGKey(0)

    # --- 1) Production path: metadata-only reshape (matches torch .view). ---
    new_shape = (4, 8, 16)                   # flat feature dim = 512
    batch = 2
    n = 1
    for d in new_shape:
        n *= d
    k1, k2 = jax.random.split(key)
    x = jax.random.normal(k1, (batch, n), dtype=jnp.float32)

    out = reshape_forward(x, new_shape)
    out = jax.block_until_ready(out)
    ref = x.reshape((batch,) + new_shape)
    assert out.shape == (batch,) + new_shape, out.shape
    assert out.dtype == x.dtype
    assert bool(jnp.array_equal(out, ref))

    # --- 2) Exercise the Pallas HBM->HBM copy kernel once (forced). ---------
    copy_shape = (16, 128)                   # flat feature dim = 2048 (lane-dense)
    cbatch = 8
    cn = 1
    for d in copy_shape:
        cn *= d
    y = jax.random.normal(k2, (cbatch, cn), dtype=jnp.float32)

    out_copy = reshape_forward_copy(y, copy_shape, force=True)
    out_copy = jax.block_until_ready(out_copy)
    ref_copy = y.reshape((cbatch,) + copy_shape)
    assert out_copy.shape == (cbatch,) + copy_shape, out_copy.shape
    assert out_copy.dtype == y.dtype
    assert bool(jnp.array_equal(out_copy, ref_copy))

    print("KERNEL_OK")
</pallas_src>

<mosaic_0001>
module attributes {stable_mosaic.version = 11 : i64} {
  func.func @_hbm_copy_kernel(%arg0: memref<8x2048xf32, #tpu.memory_space<any>>, %arg1: memref<8x2048xf32, #tpu.memory_space<any>>, %arg2: memref<!tpu.dma_semaphore, #tpu.memory_space<semaphore_mem>>) attributes {dimension_semantics = [], scalar_prefetch = 0 : i64, scratch_operands = 1 : i64, tpu.core_type = #tpu.core_type<tc>} {
    tpu.enqueue_dma source(%arg0 : memref<8x2048xf32, #tpu.memory_space<any>>) target(%arg1 : memref<8x2048xf32, #tpu.memory_space<any>>) target_semaphore(%arg2 : memref<!tpu.dma_semaphore, #tpu.memory_space<semaphore_mem>>)
    tpu.wait_dma2 semaphore(%arg2 : memref<!tpu.dma_semaphore, #tpu.memory_space<semaphore_mem>>) src(%arg0 : memref<8x2048xf32, #tpu.memory_space<any>>) dst(%arg1 : memref<8x2048xf32, #tpu.memory_space<any>>)
    return
  }
}

</mosaic_0001>

<bundles_post_ra>
// kernel: tpu_custom_call.1
= control target key start
LH: loop header
LB: loop body
LE: loop exit
PB: predicated region body
PF: predicated region fallthrough
CT: control target
= control target key end

     0   :  { %s33_s12 = smov [#allocation2]   ;;  %s34_s13 = smov [#allocation3]   ;;  %s52_s0 = inlined_call_operand.hbm [shape: f32[8,2048], index: 0, kind: input, shape index: {}]   ;;  %s53_s1 = inlined_call_operand.hbm [shape: f32[8,2048], index: 1, kind: output, shape index: {}]  }
   0x1   :  { %s10_s8 = sshll.u32 %s52_s0, 4  ;;  %s12_s11 = sshll.u32 %s53_s1, 4  ;;  %s11_s8 = int_to_ptr.hbm [resolvable:$true] %s10_s8  ;;  %s13_s11 = int_to_ptr.hbm [resolvable:$true] %s12_s11 }
   0x2   :  { %s35_s14 = smov 0  }
   0x3   :  { %16 = dma.general %s11_s8, 2048, %s13_s11, %s33_s12, %s34_s13, [#allocation4], %s35_s14, 0  }
   0x4   :  { %31 = dma.done.wait [#allocation2], 2048 }
   0x5   :  { %32 = vsyncadd [#allocation2], 4294965248 }
   0x6   :  { %21 = vsyncmov [#allocation2] }
   0x9   :  { %s22_s15 = vpop.sfrf %21 }
   0xa   :  { %p27_p0 = scmp.ne.s32.totalorder %s22_s15, 0 }
   0xc   :  { %26 = shalt.err (%p27_p0)  }

</bundles_post_ra>
